<compile_context>
chip_gen: v5e
topology: v5e:2x2
jax: 0.10.0
libtpu: 0.0.40
codegen_flags: <defaults>
</compile_context>

<pallas_src>
import functools

import jax
import jax.numpy as jnp
from jax.experimental import pallas as pl
from jax.experimental.pallas import tpu as pltpu

LANE = 128  # TPU vreg lane width


def _round_up(x, m):
    return ((x + m - 1) // m) * m


def _head_kernel(x_ref, w_ref, b_ref, o_ref, acc_ref, *,
                 hw_total, hw_ragged, inv_pool, reduce_dtype):
    # x_ref:   (tile_n, C, tile_hw)  activations (native dtype)
    # w_ref:   (C, Kp)               fc weight, pre-transposed, bf16, VMEM-resident
    # b_ref:   (1, Kp)               fc bias f32 (padded classes = -1e30)
    # o_ref:   (tile_n, Kp)          softmax output (f32)
    # acc_ref: (tile_n, C) f32       running 8x(spatial sum) scratch
    j = pl.program_id(1)

    @pl.when(j == 0)
    def _init():
        acc_ref[...] = jnp.zeros_like(acc_ref)

    tile_n, C, tile_hw = x_ref.shape

    slab = jnp.maximum(x_ref[...], 0)                       # ReLU (VPU)
    if hw_ragged:
        # Ragged HW tail: zero out lanes past the true H*W extent.
        lane = jax.lax.broadcasted_iota(jnp.int32, (1, 1, tile_hw), 2)
        slab = jnp.where(j * tile_hw + lane < hw_total, slab, 0)

    # Spatial reduction on the MXU: (tile_n*C, tile_hw) @ ones(tile_hw, 8),
    # f32 accumulate.  Every output column equals the spatial sum; the tiny
    # 8-lane fixup reduce (XLU) is 16x cheaper than reducing the raw slab.
    slab2d = slab.astype(reduce_dtype).reshape(tile_n * C, tile_hw)
    ones = jnp.ones((tile_hw, 8), reduce_dtype)
    part = jnp.dot(slab2d, ones, preferred_element_type=jnp.float32)
    acc_ref[...] += jnp.sum(part.reshape(tile_n, C, 8), axis=-1)   # = 8 * sum_s

    @pl.when(j == pl.num_programs(1) - 1)
    def _finalize():
        # inv_pool = 1/(8*H*W) turns the accumulated 8x sums into the exact mean.
        pooled = acc_ref[...] * inv_pool                             # (tile_n, C) f32
        logits = jnp.dot(pooled.astype(w_ref.dtype), w_ref[...],
                         preferred_element_type=jnp.float32) + b_ref[...]
        m = jnp.max(logits, axis=-1, keepdims=True)
        e = jnp.exp(logits - m)
        # Exact divide so output rows sum to 1 (approx reciprocal was the bug).
        o_ref[...] = (e / jnp.sum(e, axis=-1, keepdims=True)).astype(o_ref.dtype)


def _vmem_limit_bytes(tile_n, C, tile_hw, x_itemsize, Kp, cap_bytes):
    need = (2 * tile_n * C * tile_hw * x_itemsize   # double-buffered x stream
            + C * Kp * 2                            # bf16 weight, single copy
            + Kp * 4                                # bias
            + tile_n * C * 4                        # accumulator scratch
            + 2 * tile_n * Kp * 4)                  # output buffers
    return int(min(cap_bytes, max(need + need // 2 + (4 << 20), 16 << 20)))


def head_forward(x_nchw, w, b, *, tile_n=8, tile_hw=None, hw_tile_cap=512,
                 reduce_dtype=jnp.bfloat16, vmem_cap_bytes=56 * 1024 * 1024):
    """Head forward pass.

    x_nchw: (N, C, H, W) activations (f32 or bf16) -- never padded or copied.
    w:      (num_classes, C)  torch fc.weight layout.
    b:      (num_classes,)    torch fc.bias.
    tile_n: batch tile (multiple of 8, or == N); raise (64-128) for large N.
    tile_hw: spatial tile; defaults to full H*W when it fits (single reduction
             step), else a 128-multiple with in-kernel tail masking.
    vmem_cap_bytes: 56 MiB is v7x-safe; raise toward ~100 MiB on v5e/v6e and
             grow tile_hw (512-1024) / tile_n for better HBM roofline.
    """
    N, C, H, W = x_nchw.shape
    K = w.shape[0]
    HW = H * W

    if tile_hw is None:
        tile_hw = HW if HW <= hw_tile_cap else (hw_tile_cap // LANE) * LANE
    assert tile_hw == HW or tile_hw % LANE == 0, "tile_hw must be H*W or a 128-multiple"
    assert tile_n % 8 == 0 or tile_n == N, "tile_n must be a multiple of 8 (or == N)"

    Np = _round_up(N, tile_n)
    Kp = _round_up(K, LANE)
    grid = (Np // tile_n, pl.cdiv(HW, tile_hw))
    hw_ragged = (HW % tile_hw) != 0

    # --- glue-side prep (tiny; x itself is only reshaped, never copied) ---
    x3 = x_nchw.reshape(N, C, HW)
    w_t = jnp.pad(w.T.astype(jnp.bfloat16), ((0, 0), (0, Kp - K)))          # (C, Kp) bf16
    b2 = jnp.pad(b.astype(jnp.float32), (0, Kp - K),
                 constant_values=-1e30).reshape(1, Kp)                       # padded classes -> ~0 prob

    kernel = functools.partial(
        _head_kernel,
        hw_total=HW, hw_ragged=hw_ragged,
        inv_pool=1.0 / (8.0 * HW),              # folds the x8 column sum + avg-pool scale
        reduce_dtype=reduce_dtype,
    )

    out = pl.pallas_call(
        kernel,
        out_shape=jax.ShapeDtypeStruct((Np, Kp), jnp.float32),
        grid=grid,
        in_specs=[
            # x streamed from HBM, double-buffered by the pipeline.
            pl.BlockSpec((tile_n, C, tile_hw), lambda i, j: (i, 0, j)),
            # fc weight / bias: whole-array VMEM residents (fetched once,
            # single copy -- no per-step double buffering).
            pl.BlockSpec(memory_space=pltpu.MemorySpace.VMEM),
            pl.BlockSpec(memory_space=pltpu.MemorySpace.VMEM),
        ],
        out_specs=pl.BlockSpec((tile_n, Kp), lambda i, j: (i, 0)),
        scratch_shapes=[pltpu.VMEM((tile_n, C), jnp.float32)],
        compiler_params=pltpu.CompilerParams(
            dimension_semantics=("parallel", "arbitrary"),
            vmem_limit_bytes=_vmem_limit_bytes(
                tile_n, C, tile_hw, x_nchw.dtype.itemsize, Kp, vmem_cap_bytes),
        ),
    )(x3, w_t, b2)

    return out[:N, :K]


def head_reference(x_nchw, w, b):
    x = jnp.maximum(x_nchw, 0.0)
    pooled = jnp.mean(x, axis=(2, 3))                # (N, C)
    logits = pooled @ w.T + b                        # (N, K)
    return jax.nn.softmax(logits, axis=1)


if __name__ == "__main__":
    key = jax.random.PRNGKey(0)
    N, C, H, W = 2, 4, 16, 16
    num_classes = 8

    k_x, k_w, k_b = jax.random.split(key, 3)
    x = jax.random.normal(k_x, (N, C, H, W), dtype=jnp.float32)

    # Deterministic fc init (PyTorch-style uniform(-1/sqrt(C), 1/sqrt(C)))
    bound = 1.0 / (C ** 0.5)
    w = jax.random.uniform(k_w, (num_classes, C), jnp.float32, -bound, bound)
    b = jax.random.uniform(k_b, (num_classes,), jnp.float32, -bound, bound)

    ref = head_reference(x, w, b)

    # (a) multi-step reduction path: HW=256, tile_hw=128 -> 2 reduction steps
    #     (also exercises the ragged batch tile: N=2 < tile_n=8).
    out_a = jax.block_until_ready(head_forward(x, w, b, tile_n=8, tile_hw=128))
    # (b) default path: tile_hw == H*W -> single reduction step, no padding.
    out_b = jax.block_until_ready(head_forward(x, w, b))

    for out in (out_a, out_b):
        assert out.shape == (N, num_classes)
        # bf16 weight / bf16 reduce slab introduce ~1e-3-level logit error
        # (sanctioned by the review); softmax probs checked to 5e-3.
        assert jnp.allclose(out, ref, atol=5e-3, rtol=5e-3), "mismatch vs reference"
        # Exact softmax divide -> rows sum to 1 to f32 rounding.
        assert jnp.allclose(jnp.sum(out, axis=1), 1.0, atol=1e-4), "softmax rows must sum to 1"

    print("KERNEL_OK")
</pallas_src>

<mosaic_0001>
module attributes {stable_mosaic.version = 11 : i64} {
  func.func @_head_kernel(%arg0: i32, %arg1: i32, %arg2: memref<8x4x128xf32, #tpu.memory_space<vmem>>, %arg3: memref<4x128xbf16, #tpu.memory_space<vmem>>, %arg4: memref<1x128xf32, #tpu.memory_space<vmem>>, %arg5: memref<8x128xf32, #tpu.memory_space<vmem>>, %arg6: memref<8x4xf32, #tpu.memory_space<vmem>>) attributes {dimension_semantics = [#tpu.dimension_semantics<parallel>, #tpu.dimension_semantics<arbitrary>], iteration_bounds = array<i64: 1, 2>, scalar_prefetch = 0 : i64, scratch_operands = 1 : i64, tpu.core_type = #tpu.core_type<tc>, window_params = [{transform_indices = @transform_0, window_bounds = array<i64: 8, 4, 128>}, {pipeline_mode = #tpu.pipeline_mode<synchronous>, transform_indices = @transform_1, window_bounds = array<i64: 4, 128>}, {pipeline_mode = #tpu.pipeline_mode<synchronous>, transform_indices = @transform_2, window_bounds = array<i64: 1, 128>}, {transform_indices = @transform_3, window_bounds = array<i64: 8, 128>}]} {
    %c0_i32 = arith.constant 0 : i32
    %0 = arith.cmpi eq, %arg1, %c0_i32 : i32
    %1 = arith.extui %0 : i1 to i32
    %c0_i32_0 = arith.constant 0 : i32
    %2 = arith.cmpi ne, %1, %c0_i32_0 : i32
    scf.if %2 {
      %cst_11 = arith.constant 0.000000e+00 : f32
      %18 = vector.broadcast %cst_11 : f32 to vector<8x4xf32>
      %c0_12 = arith.constant 0 : index
      %c0_13 = arith.constant 0 : index
      %19 = vector.load %arg6[%c0_12, %c0_13] : memref<8x4xf32, #tpu.memory_space<vmem>>, vector<8x4xf32>
      tpu.vector_store %arg6[%c0_12, %c0_13], %18 {strides = array<i32>} : memref<8x4xf32, #tpu.memory_space<vmem>>, vector<8x4xf32>,
    } else {
    }
    %c0 = arith.constant 0 : index
    %c0_1 = arith.constant 0 : index
    %c0_2 = arith.constant 0 : index
    %3 = vector.load %arg2[%c0, %c0_1, %c0_2] : memref<8x4x128xf32, #tpu.memory_space<vmem>>, vector<8x4x128xf32>
    %cst = arith.constant 0.000000e+00 : f32
    %4 = vector.broadcast %cst : f32 to vector<8x4x128xf32>
    %5 = arith.maximumf %3, %4 : vector<8x4x128xf32>
    %6 = arith.truncf %5 : vector<8x4x128xf32> to vector<8x4x128xbf16>
    %7 = vector.shape_cast %6 : vector<8x4x128xbf16> to vector<32x128xbf16>
    %cst_3 = arith.constant 1.000000e+00 : bf16
    %8 = vector.broadcast %cst_3 : bf16 to vector<128x8xbf16>
    %cst_4 = arith.constant dense<0.000000e+00> : vector<32x8xf32>
    %9 = tpu.matmul %7, %8, %cst_4 {dimension_numbers = #tpu.dot_dimension_numbers<[1], [0], [0], [1], [0, 0, 1, 1], [], []>} : vector<32x128xbf16>, vector<128x8xbf16>, vector<32x8xf32> -> vector<32x8xf32>
    %c0_5 = arith.constant 0 : index
    %c0_6 = arith.constant 0 : index
    %10 = vector.load %arg6[%c0_5, %c0_6] : memref<8x4xf32, #tpu.memory_space<vmem>>, vector<8x4xf32>
    %11 = vector.shape_cast %9 : vector<32x8xf32> to vector<8x4x8xf32>
    %cst_7 = arith.constant dense<0.000000e+00> : vector<8x4xf32>
    %12 = vector.multi_reduction <add>, %11, %cst_7 [2] : vector<8x4x8xf32> to vector<8x4xf32>
    %13 = arith.addf %10, %12 : vector<8x4xf32>
    %c0_8 = arith.constant 0 : index
    %c0_9 = arith.constant 0 : index
    %14 = vector.load %arg6[%c0_8, %c0_9] : memref<8x4xf32, #tpu.memory_space<vmem>>, vector<8x4xf32>
    tpu.vector_store %arg6[%c0_8, %c0_9], %13 {strides = array<i32>} : memref<8x4xf32, #tpu.memory_space<vmem>>, vector<8x4xf32>,
    %c1_i32 = arith.constant 1 : i32
    %15 = arith.cmpi eq, %arg1, %c1_i32 : i32
    %16 = arith.extui %15 : i1 to i32
    %c0_i32_10 = arith.constant 0 : i32
    %17 = arith.cmpi ne, %16, %c0_i32_10 : i32
    scf.if %17 {
      %c0_11 = arith.constant 0 : index
      %c0_12 = arith.constant 0 : index
      %18 = vector.load %arg6[%c0_11, %c0_12] : memref<8x4xf32, #tpu.memory_space<vmem>>, vector<8x4xf32>
      %cst_13 = arith.constant 4.8828125E-4 : f32
      %19 = vector.broadcast %cst_13 : f32 to vector<8x4xf32>
      %20 = arith.mulf %18, %19 : vector<8x4xf32>
      %21 = arith.truncf %20 : vector<8x4xf32> to vector<8x4xbf16>
      %c0_14 = arith.constant 0 : index
      %c0_15 = arith.constant 0 : index
      %22 = vector.load %arg3[%c0_14, %c0_15] : memref<4x128xbf16, #tpu.memory_space<vmem>>, vector<4x128xbf16>
      %cst_16 = arith.constant dense<0.000000e+00> : vector<8x128xf32>
      %23 = tpu.matmul %21, %22, %cst_16 {dimension_numbers = #tpu.dot_dimension_numbers<[1], [0], [0], [1], [0, 0, 1, 1], [], []>} : vector<8x4xbf16>, vector<4x128xbf16>, vector<8x128xf32> -> vector<8x128xf32>
      %c0_17 = arith.constant 0 : index
      %c0_18 = arith.constant 0 : index
      %24 = vector.load %arg4[%c0_17, %c0_18] : memref<1x128xf32, #tpu.memory_space<vmem>>, vector<1x128xf32>
      %25 = vector.broadcast %24 : vector<1x128xf32> to vector<8x128xf32>
      %26 = arith.addf %23, %25 : vector<8x128xf32>
      %cst_19 = arith.constant dense<0xFF800000> : vector<8xf32>
      %27 = vector.multi_reduction <maximumf>, %26, %cst_19 [1] : vector<8x128xf32> to vector<8xf32>
      %28 = vector.shape_cast %27 : vector<8xf32> to vector<8x1xf32>
      %29 = vector.broadcast %28 : vector<8x1xf32> to vector<8x128xf32>
      %30 = arith.subf %26, %29 : vector<8x128xf32>
      %31 = math.exp %30 : vector<8x128xf32>
      %cst_20 = arith.constant dense<0.000000e+00> : vector<8xf32>
      %32 = vector.multi_reduction <add>, %31, %cst_20 [1] : vector<8x128xf32> to vector<8xf32>
      %33 = vector.shape_cast %32 : vector<8xf32> to vector<8x1xf32>
      %34 = vector.broadcast %33 : vector<8x1xf32> to vector<8x128xf32>
      %35 = arith.divf %31, %34 : vector<8x128xf32>
      %c0_21 = arith.constant 0 : index
      %c0_22 = arith.constant 0 : index
      %36 = vector.load %arg5[%c0_21, %c0_22] : memref<8x128xf32, #tpu.memory_space<vmem>>, vector<8x128xf32>
      tpu.vector_store %arg5[%c0_21, %c0_22], %35 {strides = array<i32>} : memref<8x128xf32, #tpu.memory_space<vmem>>, vector<8x128xf32>,
    } else {
    }
    return
  }
  func.func @transform_0(%arg0: i32, %arg1: i32) -> (i32, i32, i32) {
    %c0_i32 = arith.constant 0 : i32
    %c0_i32_0 = arith.constant 0 : i32
    return %arg0, %c0_i32, %arg1 : i32, i32, i32
  }
  func.func @transform_1(%arg0: i32, %arg1: i32) -> (i32, i32) {
    %c0_i32 = arith.constant 0 : i32
    %c0_i32_0 = arith.constant 0 : i32
    %c0_i32_1 = arith.constant 0 : i32
    return %c0_i32, %c0_i32_0 : i32, i32
  }
  func.func @transform_2(%arg0: i32, %arg1: i32) -> (i32, i32) {
    %c0_i32 = arith.constant 0 : i32
    %c0_i32_0 = arith.constant 0 : i32
    %c0_i32_1 = arith.constant 0 : i32
    return %c0_i32, %c0_i32_0 : i32, i32
  }
  func.func @transform_3(%arg0: i32, %arg1: i32) -> (i32, i32) {
    %c0_i32 = arith.constant 0 : i32
    %c0_i32_0 = arith.constant 0 : i32
    return %arg0, %c0_i32 : i32, i32
  }
}

</mosaic_0001>

<bundles_post_ra>
// kernel: tpu_custom_call.1
= control target key start
LH: loop header
LB: loop body
LE: loop exit
PB: predicated region body
PF: predicated region fallthrough
CT: control target
= control target key end

     0   :  { %8 = vsyncpa [#allocation4], 0  ;;  %s910_s0 = inlined_call_operand.hbm [shape: f32[2,4,256], index: 0, kind: input, shape index: {}]   ;;  %s911_s1 = inlined_call_operand.hbm [shape: bf16[4,128], index: 1, kind: input, shape index: {}]   ;;  %s912_s2 = inlined_call_operand.vmem [shape: f32[1,128], index: 2, kind: input, shape index: {}]   ;;  %s913_s3 = inlined_call_operand.hbm [shape: f32[8,128], index: 3, kind: output, shape index: {}]  }
   0x1   :  { %10 = vsyncpa [#allocation4 + $0x1], 0 }
   0x2   :  { %11 = vsyncpa [#allocation7], 0 }
   0x3   :  { %12 = vsyncpa [#allocation5], 0  ;;  %s784_s12 = smov 0   ;;  %s786_s13 = smov 0  }
   0x4   :  { %s788_s14 = smov 0   ;;  %s790_s15 = smov 0  }
   0x5   :  { %s792_s16 = smov 0   ;;  %s794_s17 = smov 0  }
   0x6 LB: > { %s514_s18 = sadd.s32 4294967295, %s755_s17   ;;  %s27_s19 = sadd.s32 1, %s751_s16  ;;  %s755_s17 = sphi %s794_s17, %s18_s17   ;;  %s751_s16 = sphi %s792_s16, %s922_s16   ;;  %s747_s15 = sphi %s790_s15, %s921_s15   ;;  %s743_s14 = sphi %s788_s14, %s920_s14   ;;  %s739_s13 = sphi %s786_s13, %s919_s13   ;;  %s735_s12 = sphi %s784_s12, %s918_s12  }
   0x7   : > { %p28_p0 = scmp.ge.s32.totalorder %s27_s19, 2  ;;  %s39_s20 = sadd.s32 1, %s743_s14 }
   0x8   : > { %p46_p1 = scmp.ne.s32.totalorder %s743_s14, %s739_s13  ;;  %p47_p2 = scmp.eq.s32.totalorder %s755_s17, 0 }
   0x9   : > { %s924_s19 = smov (%p28_p0, %s27_s19), 0  ;;  %p52_p4 = scmp.ne.s32.totalorder %s739_s13, %s735_s12 }
   0xa   : > { %p820_p3 = por %p47_p2, %p46_p1  ;;  %s35_s22 = ssub.s32 %s751_s16, %s924_s19 }
   0xb   : > { %p829_p5 = scmp.eq.s32.totalorder %s514_s18, 0  ;;  %p37_p6 = scmp.eq.s32.totalorder %s35_s22, 0 }
   0xc   : > { %p515_p7 = scmp.ge.s32.totalorder %s755_s17, 1  ;;  %p131_p9 = scmp.lt.s32.totalorder %s755_s17, 3 }
   0xd   : > { %p836_p8 = por %p829_p5, %p52_p4  ;;  %s143_s29 = sshll.u32 %s911_s1, 4  ;;  %s144_s29 = int_to_ptr.hbm [resolvable:$true] %s143_s29 }
   0xe   : > { %s842_s25 = scalar_select %p37_p6, %s743_s14, %s39_s20  }
   0xf   : > { %p844_p10 = pnand %p515_p7, %p131_p9  ;;  %s757_s30 = smov [#allocation6]  }
  0x10   : > { %s145_s4 = sshll.u32 %s757_s30, 4  ;;  %p517_p13 = scmp.ge.s32.totalorder %s755_s17, 2  ;;  %s146_s4 = int_to_ptr.vmem [resolvable:$true] %s145_s4 }
  0x11   : > { %p547_p11 = pneg %p844_p10 }
  0x12   : > { %155 = sbr.rel (%p517_p13) target bundleno = 33 (0x21), region = 24 }
  0x13   : > { %p548_p12 = pnand %p547_p11, %p829_p5 }
  0x15   : > { %550 = dma.hbm_to_vmem [thread:$0]  (!%p548_p12), %s144_s29, 32, %s146_s4, [#allocation7]  }
  0x17   : > { %158 = sbr.rel (!%p820_p3) target bundleno = 33 (0x21), region = 28  ;;  %s159_s5 = sand.u32 (%p820_p3), 1, %s743_s14  }
  0x18   : > { %s518_s6 = sshll.u32 (%p820_p3), %s159_s5, 5  ;;  %s160_s7 = scalar_lea.sflag (%p820_p3), [#allocation4], %s159_s5 }
  0x19   : > { %s163_s8 = scalar_lea.vmem (%p820_p3), [#allocation3], %s518_s6 }
  0x1c   : > { %169 = vsyncadd %s160_s7, 384  ;;  %s519_s9 = sshll.u32 %s751_s16, 2  ;;  %s178_s10 = sshll.u32 %s163_s8, 4  ;;  %s179_s10 = int_to_ptr.vmem [resolvable:$true] %s178_s10 }
  0x1d   : > { %s174_s20 = scalar_lea.hbm %s910_s0, %s519_s9  ;;  %s758_s27 = smov 128  }
  0x1e   : > { %s176_s22 = sshll.u32 %s174_s20, 4  ;;  %s759_s28 = smov 64   ;;  %s177_s22 = int_to_ptr.hbm [resolvable:$true] %s176_s22 }
  0x1f   : > { %s760_s21 = smov 4  }
  0x20   : > { %184 = dma.hbm_to_vmem [thread:$0]  %s177_s22, 128, %s179_s10, %s160_s7, %s758_s27, %s759_s28, %s760_s21  }
  0x21 PF: > { %190 = sbr.rel (%p844_p10) target bundleno = 763 (0x2fb), region = 32  ;;  %s192_s29 = sand.u32 (!%p844_p10), 1, %s739_s13  }
  0x22   : > { %s521_s30 = sshll.u32 (!%p844_p10), %s192_s29, 5  ;;  %s193_s4 = scalar_lea.sflag (!%p844_p10), [#allocation4], %s192_s29 }
  0x23   : > { %s196_s5 = scalar_lea.vmem (!%p844_p10), [#allocation3], %s521_s30 }
  0x26   : > { %722 = dma.done.wait (%p836_p8), %s193_s4, 512  }
  0x27   : > { %724 = vsyncadd (%p836_p8), %s193_s4, 4294966784 }
  0x28   : > { %726 = dma.done.wait (%p829_p5), [#allocation7], 32  }
  0x29   : > { %728 = vsyncadd (%p829_p5), [#allocation7], 4294967264  ;;  %p523_p0 = scmp.ne.s32.totalorder %s747_s15, 0 }
  0x2b   : > { %228 = sbr.rel (%p523_p0) target bundleno = 50 (0x32), region = 44 }
  0x30   : > { %vm229_vm0 = vcmask 31744   ;;  %v761_v0 = vmov 0.0  }
  0x31   : > { %230 = vst.msk [vmem:[#allocation2] sm:$0xff] %vm229_vm0, %v761_v0 }
  0x32 PF: > { %v231_v1 = vld [vmem:[%s196_s5] sm:$0xf]  ;;  %v232_v2 = vld [vmem:[%s196_s5 + $0x4] sm:$0xf]  ;;  %v762_v3 = vmov 1065369472   ;;  %v347_v45 = vlaneseq }
  0x33   : > { %282 = vmatpush.bf16.msra.mxu0 %v762_v3  ;;  %530 = vmatpush.bf16.msra.mxu1 %v762_v3  ;;  %v233_v4 = vld [vmem:[%s196_s5 + $0x8] sm:$0xf]  ;;  %v234_v5 = vld [vmem:[%s196_s5 + $0xc] sm:$0xf]  ;;  %v239_v6 = vmax.f32 %v231_v1, 0.0  ;;  %v240_v7 = vmax.f32 %v232_v2, 0.0 }
  0x34   : > { %v241_v8 = vmax.f32 %v233_v4, 0.0  ;;  %v242_v9 = vmax.f32 %v234_v5, 0.0  ;;  %v235_v10 = vld [vmem:[%s196_s5 + $0x10] sm:$0xf]  ;;  %v236_v11 = vld [vmem:[%s196_s5 + $0x14] sm:$0xf] }
  0x35   : > { %v247_v12 = vpack.c.bf16 %v239_v6, %v239_v6  ;;  %v248_v13 = vpack.c.bf16 %v240_v7, %v240_v7  ;;  %v237_v14 = vld [vmem:[%s196_s5 + $0x18] sm:$0xf]  ;;  %v238_v15 = vld [vmem:[%s196_s5 + $0x1c] sm:$0xf]  ;;  %v243_v16 = vmax.f32 %v235_v10, 0.0  ;;  %v244_v17 = vmax.f32 %v236_v11, 0.0 }
  0x36   : > { %v249_v18 = vpack.c.bf16 %v241_v8, %v241_v8  ;;  %v250_v19 = vpack.c.bf16 %v242_v9, %v242_v9  ;;  %v245_v20 = vmax.f32 %v237_v14, 0.0  ;;  %v246_v21 = vmax.f32 %v238_v15, 0.0  ;;  %p524_p1 = scmp.ne.s32.totalorder %s747_s15, 1 }
  0x37   : > { %283 = vmatpush.bf16.msra.mxu0 %v762_v3  ;;  %531 = vmatpush.bf16.msra.mxu1 %v762_v3  ;;  %256 = vst [vmem:[#allocation1] ss:$4 sm:$0xff] %v247_v12  ;;  %v251_v22 = vpack.c.bf16 %v243_v16, %v243_v16  ;;  %v252_v23 = vpack.c.bf16 %v244_v17, %v244_v17  ;;  %vm314_vm1 = vcmask 60416   ;;  %v348_v49 = vand.u32 127, %v347_v45 }
  0x38   : > { %259 = vst [vmem:[#allocation1 + $0x1] ss:$4 sm:$0xff] %v248_v13  ;;  %v253_v24 = vpack.c.bf16 %v245_v20, %v245_v20  ;;  %v254_v25 = vpack.c.bf16 %v246_v21, %v246_v21  ;;  %vm357_vm2 = vcmask 1041409   ;;  %vm359_vm3 = vcmask 1042434   ;;  %v301_v2 = vld [vmem:[#allocation2] sm:$0xff] }
  0x39   : > { %262 = vst [vmem:[#allocation1 + $0x2] ss:$4 sm:$0xff] %v249_v18  ;;  %vm361_vm4 = vcmask 1043459   ;;  %vm363_vm5 = vcmask 1044484   ;;  %vm365_vm6 = vcmask 1045509   ;;  %vm367_vm7 = vcmask 1046534  }
  0x3a   : > { %265 = vst [vmem:[#allocation1 + $0x3] ss:$4 sm:$0xff] %v250_v19  ;;  %vm369_vm8 = vcmask 1047559   ;;  %vm373_vm9 = vcmask 31744  }
  0x3b   : > { %284 = vmatpush.bf16.msra.mxu0 %v762_v3  ;;  %532 = vmatpush.bf16.msra.mxu1 %v762_v3  ;;  %268 = vst [vmem:[#allocation1 + $0x20] ss:$4 sm:$0xff] %v251_v22 }
  0x3c   : > { %271 = vst [vmem:[#allocation1 + $0x21] ss:$4 sm:$0xff] %v252_v23 }
  0x3d   : > { %274 = vst [vmem:[#allocation1 + $0x22] ss:$4 sm:$0xff] %v253_v24 }
  0x3e   : > { %277 = vst [vmem:[#allocation1 + $0x23] ss:$4 sm:$0xff] %v254_v25 }
  0x3f   : > { %285 = vmatpush.bf16.msra.mxu0 %v762_v3  ;;  %533 = vmatpush.bf16.msra.mxu1 %v762_v3 }
  0x41   : > { %v278_v26 = vld.sshfl [vmem:[#allocation1] sm:$0xff pattern:$0x73625140] }
  0x43   : > { %286 = vmatpush.bf16.msra.mxu0 %v762_v3  ;;  %534 = vmatpush.bf16.msra.mxu1 %v762_v3 }
  0x45   : > { %v279_v27 = vld.sshfl [vmem:[#allocation1 + $0x20] sm:$0xff pattern:$0x73625140] }
  0x47   : > { %287 = vmatpush.bf16.msra.mxu0 %v762_v3  ;;  %535 = vmatpush.bf16.msra.mxu1 %v762_v3 }
  0x4b   : > { %288 = vmatpush.bf16.msra.mxu0 %v762_v3  ;;  %536 = vmatpush.bf16.msra.mxu1 %v762_v3 }
  0x4f   : > { %289 = vmatpush.bf16.msra.mxu0 %v762_v3  ;;  %537 = vmatpush.bf16.msra.mxu1 %v762_v3 }
  0x52   : > { %290 = vmatmul.bf16.vlgmr.msra.gmra.mxu0 %v278_v26  ;;  %295 = vmatmul.bf16.vlgmr.msra.gmra.mxu1 %v279_v27 }
  0xcf   : > { %v291_v28 = vpop.f32.mrf.mxu0  ;;  %v296_v29 = vpop.f32.mrf.mxu1 }
  0xd0   : > { %v315_v30 = vsel %vm314_vm1, %v291_v28, 0.0  ;;  %v327_v31 = vsel %vm314_vm1, %v296_v29, 0.0  ;;  %v308_v32 = vrot.slane %v296_v29, 4  ;;  %v306_v33 = vrot.slane %v291_v28, 4 }
  0xd1   : > { %316 = vadd.xlane.f32.xlu0 %v315_v30  ;;  %328 = vadd.xlane.f32.xlu2 %v327_v31 }
  0xd2   : > { %v330_v35 = vsel %vm314_vm1, %v308_v32, 0.0  ;;  %v318_v36 = vsel %vm314_vm1, %v306_v33, 0.0 }
  0xd7   : > { %v293_v34 = vpop.f32.mrf.mxu0  ;;  %v298_v39 = vpop.f32.mrf.mxu1 }
  0xd8   : > { %v321_v37 = vsel %vm314_vm1, %v293_v34, 0.0  ;;  %v307_v38 = vrot.slane %v293_v34, 4  ;;  %v333_v40 = vsel %vm314_vm1, %v298_v39, 0.0  ;;  %v309_v42 = vrot.slane %v298_v39, 4 }
  0xd9   : > { %319 = vadd.xlane.f32.xlu0 %v318_v36  ;;  %322 = vadd.xlane.f32.xlu1 %v321_v37 }
  0xda   : > { %331 = vadd.xlane.f32.xlu2 %v330_v35  ;;  %v324_v41 = vsel %vm314_vm1, %v307_v38, 0.0  ;;  %v336_v43 = vsel %vm314_vm1, %v309_v42, 0.0 }
  0xe1   : > { %334 = vadd.xlane.f32.xlu0 %v333_v40  ;;  %325 = vadd.xlane.f32.xlu1 %v324_v41 }
  0xe9   : > { %337 = vadd.xlane.f32.xlu1 %v336_v43 }
 0x144   : > { %v317_v44 = vpop.xlane.xlu0 %316  ;;  %v329_v46 = vpop.xlane.xlu2 %328 }
 0x145   : > { %v349_v51 = vperm.slane %v317_v44, %v348_v49  ;;  %v353_v56 = vperm.slane %v329_v46, %v348_v49 }
 0x14c   : > { %v320_v47 = vpop.xlane.xlu0 %319  ;;  %v323_v48 = vpop.xlane.xlu1 %322 }
 0x14d   : > { %v350_v50 = vperm.slane %v320_v47, %v348_v49  ;;  %v351_v52 = vperm.slane %v323_v48, %v348_v49  ;;  %v332_v58 = vpop.xlane.xlu2 %331 }
 0x14e   : > { %v354_v61 = vperm.slane %v332_v58, %v348_v49 }
 0x14f   : > { %v358_v53 = vsel %vm357_vm2, %v350_v50, %v349_v51 }
 0x150   : > { %v360_v57 = vsel %vm359_vm3, %v351_v52, %v358_v53 }
 0x154   : > { %v326_v54 = vpop.xlane.xlu1 %325  ;;  %v335_v62 = vpop.xlane.xlu0 %334 }
 0x155   : > { %v352_v55 = vperm.slane %v326_v54, %v348_v49  ;;  %v355_v0 = vperm.slane %v335_v62, %v348_v49 }
 0x157   : > { %v362_v59 = vsel %vm361_vm4, %v352_v55, %v360_v57 }
 0x158   : > { %v364_v60 = vsel %vm363_vm5, %v353_v56, %v362_v59 }
 0x159   : > { %v366_v63 = vsel %vm365_vm6, %v354_v61, %v364_v60 }
 0x15a   : > { %v368_v4 = vsel %vm367_vm7, %v355_v0, %v366_v63 }
 0x15c   : > { %v338_v1 = vpop.xlane.xlu1 %337 }
 0x15d   : > { %v356_v3 = vperm.slane %v338_v1, %v348_v49 }
 0x15e   : > { %378 = sbr.rel (%p524_p1) target bundleno = 757 (0x2f5), region = 48 }
 0x15f   : > { %v370_v5 = vsel %vm369_vm8, %v356_v3, %v368_v4 }
 0x160   : > { %v372_v6 = vadd.f32 %v370_v5, %v301_v2 }
 0x162   : > { %374 = vst.msk [vmem:[#allocation2] sm:$0xff] %vm373_vm9, %v372_v6 }
 0x163   : > { %v382_v7 = vld [vmem:[#allocation6] sm:$0x3]  ;;  %vm390_vm10 = vcmask 1041408   ;;  %v610_v12 = vld [vmem:[%s912_s2] ss:$0 sm:$0xff] }
 0x164   : > { %v392_v9 = vsel %vm390_vm10, %v382_v7, 0 }
 0x165   : > { %401 = vmatpush.bf16.msra.mxu0 %v392_v9 }
 0x169   : > { %v379_v8 = vld [vmem:[#allocation2] sm:$0xff] }
 0x16a   : > { %v380_v10 = vmul.f32 0.00048828125, %v379_v8 }
 0x16c   : > { %v381_v11 = vpack.c.bf16 %v380_v10, %v380_v10 }
 0x16e   : > { %525 = vmatmul.msk.bf16.vlgmr.msra.gmra.mxu0 %vm373_vm9, %v381_v11 }
 0x1eb   : > { %v403_v13 = vpop.f32.mrf.mxu0 }
 0x1ec   : > { %v404_v14 = vadd.f32 %v610_v12, %v403_v13 }
 0x1ee   : > { %407 = vmax.xlane.f32.xlu0 %v404_v14 }
 0x1f3   : > { %v405_v15 = vpop.f32.mrf.mxu0 }
 0x261   : > { %v408_v16 = vpop.xlane.xlu0 %407 }
 0x262   : > { %v409_v17 = vsub.f32 %v404_v14, %v408_v16 }
 0x264   : > { %v410_v18 = vmul.f32 1.442695, %v409_v17 }
 0x266   : > { %611 = vpow2.f32 %v410_v18 }
 0x26c   : > { %v612_v19 = vpop.eup %611 }
 0x26d   : > { %412 = vadd.xlane.f32.xlu0 %v612_v19 }
 0x2e0   : > { %v413_v20 = vpop.xlane.xlu0 %412 }
 0x2e1   : > { %613 = vrcp.f32 %v413_v20  ;;  %v425_v24 = vand.u32 2147483648, %v413_v20  ;;  %v423_v26 = vand.u32 2147483647, %v413_v20  ;;  %vm419_vm12 = vweird.f32 %v413_v20 }
 0x2e3   : > { %v426_v28 = vor.u32 1.1754944e-38, %v425_v24  ;;  %vm424_vm14 = vcmp.eq.f32.partialorder %v423_v26, 8.507059e+37 }
 0x2e7   : > { %v614_v21 = vpop.eup %613 }
 0x2e8   : > { %v415_v22 = vmul.f32 %v614_v21, %v413_v20  ;;  %vm420_vm11 = vweird.f32 %v614_v21 }
 0x2e9   : > { %vm421_vm13 = vmor %vm419_vm12, %vm420_vm11 }
 0x2ea   : > { %v416_v23 = vsub.f32 1.0, %v415_v22 }
 0x2ec   : > { %v417_v25 = vmul.f32 %v614_v21, %v416_v23 }
 0x2ee   : > { %v418_v27 = vadd.f32 %v614_v21, %v417_v25 }
 0x2f0   : > { %v422_v29 = vsel %vm421_vm13, %v614_v21, %v418_v27 }
 0x2f1   : > { %v427_v30 = vsel %vm424_vm14, %v426_v28, %v422_v29 }
 0x2f2   : > { %v428_v31 = vmul.f32 %v612_v19, %v427_v30 }
 0x2f4   : > { %429 = vst [vmem:[#allocation8] sm:$0xff] %v428_v31 }
 0x2f5 PF: > { %p553_p2 = scmp.eq.s32.totalorder %s514_s18, 1  ;;  %s440_s6 = sshll.u32 %s913_s3, 4  ;;  %s441_s6 = int_to_ptr.hbm [resolvable:$true] %s440_s6 }
 0x2f6   : > { %s763_s7 = smov [#allocation8]  }
 0x2f7   : > { %s438_s8 = sshll.u32 %s763_s7, 4  ;;  %s439_s8 = int_to_ptr.vmem [resolvable:$true] %s438_s8 }
 0x2f8   : > { %544 = dma.vmem_to_hbm [thread:$0]  (%p553_p2), %s439_s8, 128, %s441_s6, [#allocation5]  }
 0x2f9   : > { %730 = dma.done.wait (%p553_p2), [#allocation5], 128  }
 0x2fa   : > { %732 = vsyncadd (%p553_p2), [#allocation5], 4294967168 }
 0x2fb PF: > { %s18_s17 = sadd.s32 1, %s755_s17   ;;  %s918_s12 = smov %s739_s13 }
 0x2fc   : > { %p15_p3 = scmp.ge.s32.totalorder %s18_s17, 4   ;;  %s919_s13 = smov %s743_s14 }
 0x2fd   : > { %s920_s14 = smov %s842_s25  ;;  %s921_s15 = smov %s751_s16 }
 0x2fe   : > { %s922_s16 = smov %s924_s19  ;;  %17 = sbr.rel (!%p15_p3) target bundleno = 6 (0x6), region = 89 }
 0x303   :  { %454 = vsyncpa [#allocation4], 1 }
 0x304   :  { %456 = vsyncpa [#allocation4 + $0x1], 1 }
 0x305   :  { %457 = vsyncpa [#allocation7], 1 }
 0x306   :  { %458 = vsyncpa [#allocation5], 1 }
 0x307   :  { %460 = vsyncpa [#allocation5 + $0x1], 1 }

</bundles_post_ra>
